<compile_context>
chip_gen: v6e
topology: v6e:2x2x1
jax: 0.10.0
libtpu: 0.0.40
codegen_flags: <defaults>
</compile_context>

<pallas_src>
import functools

import numpy as np
import jax
import jax.numpy as jnp
from jax.experimental import pallas as pl
from jax.experimental.pallas import tpu as pltpu


LEAKYRELU_SLOPE = 0.2   # assumed; constant not provided in the snippet
BN_EPS = 1e-5


def down_block_kernel(x_ref, w_ref, g_ref, b_ref, o_ref, *, oh, ow, c_in, eps, slope):
    """One grid step = conv for one full image; BN + LeakyReLU epilogue on the last step.

    x_ref : (1, OH+1, OW+1, 4*C_in) bf16   space-to-depth padded input slab (per image)
    w_ref : (4, 4*C_in, C_out)      bf16   per-tap weight matrices (resident)
    g_ref : (1, 1, C_out)           f32    BatchNorm gamma
    b_ref : (1, 1, C_out)           f32    BatchNorm beta
    o_ref : (N, OH*OW, C_out)       f32    VMEM-resident conv result / final output
    """
    n = pl.program_id(0)
    m = oh * ow
    k4 = 4 * c_in

    img = x_ref[0]                                   # (OH+1, OW+1, 4*C_in) bf16, in VMEM
    acc = None
    for dh in (0, 1):
        for dw in (0, 1):
            tap = img[dh:dh + oh, dw:dw + ow, :].reshape(m, k4)
            part = jnp.dot(tap, w_ref[2 * dh + dw],
                           preferred_element_type=jnp.float32)
            acc = part if acc is None else acc + part
    o_ref[n] = acc                                    # stash conv tile (f32, stays in VMEM)

    @pl.when(n == pl.num_programs(0) - 1)
    def _epilogue():
        conv = o_ref[...]                             # (N, M, C_out), all resident in VMEM
        cnt = jnp.float32(conv.shape[0] * conv.shape[1])
        mean = jnp.sum(jnp.sum(conv, axis=1, keepdims=True),
                       axis=0, keepdims=True) / cnt
        diff = conv - mean
        var = jnp.sum(jnp.sum(diff * diff, axis=1, keepdims=True),
                      axis=0, keepdims=True) / cnt    # two-pass (biased) variance
        scale = g_ref[...] * jax.lax.rsqrt(var + eps)
        shift = b_ref[...] - mean * scale
        y = conv * scale + shift
        o_ref[...] = jnp.where(y >= 0.0, y, slope * y)


def down_block_forward(x_nchw, w, gamma, beta, eps=BN_EPS, slope=LEAKYRELU_SLOPE):
    """DownBlock forward: Conv2d(4,2,1,bias=False) -> BatchNorm2d (train) -> LeakyReLU."""
    x_nchw = x_nchw.astype(jnp.float32)
    N, C_in, H, W_sp = x_nchw.shape
    C_out = w.shape[0]
    assert H % 2 == 0 and W_sp % 2 == 0, "stride-2 conv expects even spatial dims"
    OH, OW = H // 2, W_sp // 2
    OHp, OWp = OH + 1, OW + 1
    K4 = 4 * C_in
    M = OH * OW

    # -- single cheap layout pass: pad + stride-2 space-to-depth (no im2col tensor) --
    x = jnp.transpose(x_nchw, (0, 2, 3, 1))                        # NHWC
    xp = jnp.pad(x, ((0, 0), (1, 1), (1, 1), (0, 0)))              # (N, H+2, W+2, C_in)
    s2d = xp.reshape(N, OHp, 2, OWp, 2, C_in)
    s2d = jnp.transpose(s2d, (0, 1, 3, 2, 4, 5)).reshape(N, OHp, OWp, K4)
    s2d = s2d.astype(jnp.bfloat16)                                 # bf16 MXU operand

    # -- weight (C_out, C_in, 4, 4) -> 4 tap matrices (4, 4*C_in, C_out), bf16 --
    wt = jnp.transpose(w.astype(jnp.float32), (2, 3, 1, 0))        # (kh, kw, C_in, C_out)
    wt = wt.reshape(2, 2, 2, 2, C_in, C_out)                       # (dh, ph, dw, pw, ci, co)
    wt = jnp.transpose(wt, (0, 2, 1, 3, 4, 5))                     # (dh, dw, ph, pw, ci, co)
    w_taps = wt.reshape(4, K4, C_out).astype(jnp.bfloat16)

    g = gamma.astype(jnp.float32).reshape(1, 1, C_out)
    b = beta.astype(jnp.float32).reshape(1, 1, C_out)

    # -- VMEM budget: everything stays resident (v7x only has 64 MiB physical VMEM) --
    vmem_bytes = (2 * OHp * OWp * K4 * 2        # double-buffered bf16 input slab
                  + 4 * K4 * C_out * 2          # resident tap weights (bf16)
                  + N * M * C_out * 4           # resident conv / output block (f32)
                  + 4 * M * C_out * 4)          # in-flight tiles / headroom
    assert vmem_bytes < 24 * 1024 * 1024, (
        "activation too large for the fused VMEM-resident path")
    # TODO(synk): for activations exceeding the VMEM budget, fall back to a two-pass
    # (stats pass + apply pass) pipeline instead of the fused VMEM-resident epilogue.
    # TODO(synk): BatchNorm2d's running_mean/running_var buffer update (training-time
    # side effect) is not part of the returned activation and is not implemented.

    kernel = functools.partial(down_block_kernel, oh=OH, ow=OW, c_in=C_in,
                               eps=float(eps), slope=float(slope))

    out_flat = pl.pallas_call(
        kernel,
        out_shape=jax.ShapeDtypeStruct((N, M, C_out), jnp.float32),
        grid=(N,),
        in_specs=[
            pl.BlockSpec((1, OHp, OWp, K4), lambda n: (n, 0, 0, 0)),  # per-image slab
            pl.BlockSpec((4, K4, C_out), lambda n: (0, 0, 0)),        # weights, resident
            pl.BlockSpec((1, 1, C_out), lambda n: (0, 0, 0)),         # gamma
            pl.BlockSpec((1, 1, C_out), lambda n: (0, 0, 0)),         # beta
        ],
        # Whole output resident in VMEM across the grid; written back to HBM once.
        out_specs=pl.BlockSpec((N, M, C_out), lambda n: (0, 0, 0)),
        compiler_params=pltpu.CompilerParams(
            # Sequential grid required: the output block persists across steps and the
            # BN/LeakyReLU epilogue runs on the last step.
            dimension_semantics=("arbitrary",),
            vmem_limit_bytes=32 * 1024 * 1024),
    )(s2d, w_taps, g, b)

    # single XLA transpose back to the PyTorch NCHW interface
    y = out_flat.reshape(N, OH, OW, C_out)
    return jnp.transpose(y, (0, 3, 1, 2))


# ----------------------------------------------------------------------------
# Pure-numpy reference (Conv2d definition + train-mode BN + LeakyReLU)
# ----------------------------------------------------------------------------
def _bf16(a):
    return np.asarray(jnp.asarray(a, jnp.float32).astype(jnp.bfloat16).astype(jnp.float32))


def reference(x, w, gamma, beta, eps=BN_EPS, slope=LEAKYRELU_SLOPE):
    # Inputs are rounded to bf16 first so the comparison isolates kernel correctness
    # from the intentional bf16 quantization of the MXU operands.
    x = _bf16(x)
    w = _bf16(w)
    N, C_in, H, W_sp = x.shape
    C_out = w.shape[0]
    OH, OW = H // 2, W_sp // 2
    xp = np.pad(x, ((0, 0), (0, 0), (1, 1), (1, 1))).astype(np.float32)
    conv = np.zeros((N, C_out, OH, OW), np.float32)
    for kh in range(4):
        for kw in range(4):
            win = xp[:, :, kh:kh + 2 * OH:2, kw:kw + 2 * OW:2]     # (N, C_in, OH, OW)
            conv += np.einsum("nihw,oi->nohw", win, w[:, :, kh, kw])
    mean = conv.mean(axis=(0, 2, 3), keepdims=True)
    var = conv.var(axis=(0, 2, 3), keepdims=True)                  # biased, as PyTorch BN
    g = np.asarray(gamma, np.float32).reshape(1, C_out, 1, 1)
    b = np.asarray(beta, np.float32).reshape(1, C_out, 1, 1)
    y = (conv - mean) / np.sqrt(var + eps) * g + b
    return np.where(y >= 0, y, slope * y)


if __name__ == "__main__":
    key = jax.random.PRNGKey(0)
    N, C_in, C_out, H, W_sp = 2, 4, 8, 16, 16

    kx, kw, kg, kb = jax.random.split(key, 4)
    x = jax.random.normal(kx, (N, C_in, H, W_sp), dtype=jnp.float32)
    # Conv2d weight shape: [out_channels, in_channels, 4, 4]
    w = jax.random.normal(kw, (C_out, C_in, 4, 4), dtype=jnp.float32) * 0.1
    gamma = 1.0 + 0.1 * jax.random.normal(kg, (C_out,), dtype=jnp.float32)
    beta = 0.1 * jax.random.normal(kb, (C_out,), dtype=jnp.float32)

    fwd = jax.jit(down_block_forward)
    out = jax.block_until_ready(fwd(x, w, gamma, beta))

    ref = reference(x, w, gamma, beta)
    assert out.shape == (N, C_out, H // 2, W_sp // 2)
    np.testing.assert_allclose(np.asarray(out), ref, rtol=2e-3, atol=2e-3)

    print("KERNEL_OK")
</pallas_src>

<mosaic_0001>
module attributes {stable_mosaic.version = 11 : i64} {
  func.func @down_block_kernel(%arg0: i32, %arg1: memref<1x9x9x16xbf16, #tpu.memory_space<vmem>>, %arg2: memref<4x16x8xbf16, #tpu.memory_space<vmem>>, %arg3: memref<1x1x8xf32, #tpu.memory_space<vmem>>, %arg4: memref<1x1x8xf32, #tpu.memory_space<vmem>>, %arg5: memref<2x64x8xf32, #tpu.memory_space<vmem>>) attributes {dimension_semantics = [#tpu.dimension_semantics<arbitrary>], iteration_bounds = array<i64: 2>, scalar_prefetch = 0 : i64, scratch_operands = 0 : i64, tpu.core_type = #tpu.core_type<tc>, window_params = [{transform_indices = @transform_0, window_bounds = array<i64: 1, 9, 9, 16>}, {pipeline_mode = #tpu.pipeline_mode<synchronous>, transform_indices = @transform_1, window_bounds = array<i64: 4, 16, 8>}, {pipeline_mode = #tpu.pipeline_mode<synchronous>, transform_indices = @transform_2, window_bounds = array<i64: 1, 1, 8>}, {pipeline_mode = #tpu.pipeline_mode<synchronous>, transform_indices = @transform_3, window_bounds = array<i64: 1, 1, 8>}, {pipeline_mode = #tpu.pipeline_mode<synchronous>, transform_indices = @transform_4, window_bounds = array<i64: 2, 64, 8>}]} {
    %c0 = arith.constant 0 : index
    %c0_0 = arith.constant 0 : index
    %c0_1 = arith.constant 0 : index
    %c0_2 = arith.constant 0 : index
    %0 = vector.load %arg1[%c0, %c0_0, %c0_1, %c0_2] : memref<1x9x9x16xbf16, #tpu.memory_space<vmem>>, vector<1x9x9x16xbf16>
    %1 = vector.shape_cast %0 : vector<1x9x9x16xbf16> to vector<9x9x16xbf16>
    %2 = vector.extract_strided_slice %1 {offsets = [0, 0, 0], sizes = [8, 8, 16], strides = [1, 1, 1]} : vector<9x9x16xbf16> to vector<8x8x16xbf16>
    %3 = vector.shape_cast %2 : vector<8x8x16xbf16> to vector<64x16xbf16>
    %c0_3 = arith.constant 0 : index
    %c0_4 = arith.constant 0 : index
    %c0_5 = arith.constant 0 : index
    %4 = vector.load %arg2[%c0_3, %c0_4, %c0_5] : memref<4x16x8xbf16, #tpu.memory_space<vmem>>, vector<1x16x8xbf16>
    %5 = vector.shape_cast %4 : vector<1x16x8xbf16> to vector<16x8xbf16>
    %cst = arith.constant dense<0.000000e+00> : vector<64x8xf32>
    %6 = tpu.matmul %3, %5, %cst {dimension_numbers = #tpu.dot_dimension_numbers<[1], [0], [0], [1], [0, 0, 1, 1], [], []>} : vector<64x16xbf16>, vector<16x8xbf16>, vector<64x8xf32> -> vector<64x8xf32>
    %7 = vector.extract_strided_slice %1 {offsets = [0, 1, 0], sizes = [8, 8, 16], strides = [1, 1, 1]} : vector<9x9x16xbf16> to vector<8x8x16xbf16>
    %8 = vector.shape_cast %7 : vector<8x8x16xbf16> to vector<64x16xbf16>
    %c1 = arith.constant 1 : index
    %c0_6 = arith.constant 0 : index
    %c0_7 = arith.constant 0 : index
    %9 = vector.load %arg2[%c1, %c0_6, %c0_7] : memref<4x16x8xbf16, #tpu.memory_space<vmem>>, vector<1x16x8xbf16>
    %10 = vector.shape_cast %9 : vector<1x16x8xbf16> to vector<16x8xbf16>
    %cst_8 = arith.constant dense<0.000000e+00> : vector<64x8xf32>
    %11 = tpu.matmul %8, %10, %cst_8 {dimension_numbers = #tpu.dot_dimension_numbers<[1], [0], [0], [1], [0, 0, 1, 1], [], []>} : vector<64x16xbf16>, vector<16x8xbf16>, vector<64x8xf32> -> vector<64x8xf32>
    %12 = arith.addf %6, %11 : vector<64x8xf32>
    %13 = vector.extract_strided_slice %1 {offsets = [1, 0, 0], sizes = [8, 8, 16], strides = [1, 1, 1]} : vector<9x9x16xbf16> to vector<8x8x16xbf16>
    %14 = vector.shape_cast %13 : vector<8x8x16xbf16> to vector<64x16xbf16>
    %c2 = arith.constant 2 : index
    %c0_9 = arith.constant 0 : index
    %c0_10 = arith.constant 0 : index
    %15 = vector.load %arg2[%c2, %c0_9, %c0_10] : memref<4x16x8xbf16, #tpu.memory_space<vmem>>, vector<1x16x8xbf16>
    %16 = vector.shape_cast %15 : vector<1x16x8xbf16> to vector<16x8xbf16>
    %cst_11 = arith.constant dense<0.000000e+00> : vector<64x8xf32>
    %17 = tpu.matmul %14, %16, %cst_11 {dimension_numbers = #tpu.dot_dimension_numbers<[1], [0], [0], [1], [0, 0, 1, 1], [], []>} : vector<64x16xbf16>, vector<16x8xbf16>, vector<64x8xf32> -> vector<64x8xf32>
    %18 = arith.addf %12, %17 : vector<64x8xf32>
    %19 = vector.extract_strided_slice %1 {offsets = [1, 1, 0], sizes = [8, 8, 16], strides = [1, 1, 1]} : vector<9x9x16xbf16> to vector<8x8x16xbf16>
    %20 = vector.shape_cast %19 : vector<8x8x16xbf16> to vector<64x16xbf16>
    %c3 = arith.constant 3 : index
    %c0_12 = arith.constant 0 : index
    %c0_13 = arith.constant 0 : index
    %21 = vector.load %arg2[%c3, %c0_12, %c0_13] : memref<4x16x8xbf16, #tpu.memory_space<vmem>>, vector<1x16x8xbf16>
    %22 = vector.shape_cast %21 : vector<1x16x8xbf16> to vector<16x8xbf16>
    %cst_14 = arith.constant dense<0.000000e+00> : vector<64x8xf32>
    %23 = tpu.matmul %20, %22, %cst_14 {dimension_numbers = #tpu.dot_dimension_numbers<[1], [0], [0], [1], [0, 0, 1, 1], [], []>} : vector<64x16xbf16>, vector<16x8xbf16>, vector<64x8xf32> -> vector<64x8xf32>
    %24 = arith.addf %18, %23 : vector<64x8xf32>
    %25 = arith.index_cast %arg0 : i32 to index
    %c0_15 = arith.constant 0 : index
    %c0_16 = arith.constant 0 : index
    %26 = vector.load %arg5[%25, %c0_15, %c0_16] : memref<2x64x8xf32, #tpu.memory_space<vmem>>, vector<1x64x8xf32>
    %27 = vector.shape_cast %26 : vector<1x64x8xf32> to vector<64x8xf32>
    %28 = vector.shape_cast %24 : vector<64x8xf32> to vector<1x64x8xf32>
    tpu.vector_store %arg5[%25, %c0_15, %c0_16], %28 {strides = array<i32>} : memref<2x64x8xf32, #tpu.memory_space<vmem>>, vector<1x64x8xf32>,
    %c1_i32 = arith.constant 1 : i32
    %29 = arith.cmpi eq, %arg0, %c1_i32 : i32
    %30 = arith.extui %29 : i1 to i32
    %c0_i32 = arith.constant 0 : i32
    %31 = arith.cmpi ne, %30, %c0_i32 : i32
    scf.if %31 {
      %c0_17 = arith.constant 0 : index
      %c0_18 = arith.constant 0 : index
      %c0_19 = arith.constant 0 : index
      %32 = vector.load %arg5[%c0_17, %c0_18, %c0_19] : memref<2x64x8xf32, #tpu.memory_space<vmem>>, vector<2x64x8xf32>
      %cst_20 = arith.constant dense<0.000000e+00> : vector<2x8xf32>
      %33 = vector.multi_reduction <add>, %32, %cst_20 [1] : vector<2x64x8xf32> to vector<2x8xf32>
      %34 = vector.shape_cast %33 : vector<2x8xf32> to vector<2x1x8xf32>
      %cst_21 = arith.constant dense<0.000000e+00> : vector<1x8xf32>
      %35 = vector.multi_reduction <add>, %34, %cst_21 [0] : vector<2x1x8xf32> to vector<1x8xf32>
      %36 = vector.shape_cast %35 : vector<1x8xf32> to vector<1x1x8xf32>
      %cst_22 = arith.constant 1.280000e+02 : f32
      %37 = vector.broadcast %cst_22 : f32 to vector<1x1x8xf32>
      %38 = arith.divf %36, %37 : vector<1x1x8xf32>
      %39 = vector.broadcast %38 : vector<1x1x8xf32> to vector<2x64x8xf32>
      %40 = arith.subf %32, %39 : vector<2x64x8xf32>
      %41 = arith.mulf %40, %40 : vector<2x64x8xf32>
      %cst_23 = arith.constant dense<0.000000e+00> : vector<2x8xf32>
      %42 = vector.multi_reduction <add>, %41, %cst_23 [1] : vector<2x64x8xf32> to vector<2x8xf32>
      %43 = vector.shape_cast %42 : vector<2x8xf32> to vector<2x1x8xf32>
      %cst_24 = arith.constant dense<0.000000e+00> : vector<1x8xf32>
      %44 = vector.multi_reduction <add>, %43, %cst_24 [0] : vector<2x1x8xf32> to vector<1x8xf32>
      %45 = vector.shape_cast %44 : vector<1x8xf32> to vector<1x1x8xf32>
      %cst_25 = arith.constant 1.280000e+02 : f32
      %46 = vector.broadcast %cst_25 : f32 to vector<1x1x8xf32>
      %47 = arith.divf %45, %46 : vector<1x1x8xf32>
      %c0_26 = arith.constant 0 : index
      %c0_27 = arith.constant 0 : index
      %c0_28 = arith.constant 0 : index
      %48 = vector.load %arg3[%c0_26, %c0_27, %c0_28] : memref<1x1x8xf32, #tpu.memory_space<vmem>>, vector<1x1x8xf32>
      %cst_29 = arith.constant 9.99999974E-6 : f32
      %49 = vector.broadcast %cst_29 : f32 to vector<1x1x8xf32>
      %50 = arith.addf %47, %49 : vector<1x1x8xf32>
      %51 = math.rsqrt %50 : vector<1x1x8xf32>
      %52 = arith.mulf %48, %51 : vector<1x1x8xf32>
      %c0_30 = arith.constant 0 : index
      %c0_31 = arith.constant 0 : index
      %c0_32 = arith.constant 0 : index
      %53 = vector.load %arg4[%c0_30, %c0_31, %c0_32] : memref<1x1x8xf32, #tpu.memory_space<vmem>>, vector<1x1x8xf32>
      %54 = arith.mulf %38, %52 : vector<1x1x8xf32>
      %55 = arith.subf %53, %54 : vector<1x1x8xf32>
      %56 = vector.broadcast %52 : vector<1x1x8xf32> to vector<2x64x8xf32>
      %57 = arith.mulf %32, %56 : vector<2x64x8xf32>
      %58 = vector.broadcast %55 : vector<1x1x8xf32> to vector<2x64x8xf32>
      %59 = arith.addf %57, %58 : vector<2x64x8xf32>
      %cst_33 = arith.constant 0.000000e+00 : f32
      %60 = vector.broadcast %cst_33 : f32 to vector<2x64x8xf32>
      %61 = arith.cmpf oge, %59, %60 : vector<2x64x8xf32>
      %cst_34 = arith.constant 2.000000e-01 : f32
      %62 = vector.broadcast %cst_34 : f32 to vector<2x64x8xf32>
      %63 = arith.mulf %62, %59 : vector<2x64x8xf32>
      %64 = arith.select %61, %59, %63 : vector<2x64x8xi1>, vector<2x64x8xf32>
      %c0_35 = arith.constant 0 : index
      %c0_36 = arith.constant 0 : index
      %c0_37 = arith.constant 0 : index
      %65 = vector.load %arg5[%c0_35, %c0_36, %c0_37] : memref<2x64x8xf32, #tpu.memory_space<vmem>>, vector<2x64x8xf32>
      tpu.vector_store %arg5[%c0_35, %c0_36, %c0_37], %64 {strides = array<i32>} : memref<2x64x8xf32, #tpu.memory_space<vmem>>, vector<2x64x8xf32>,
    } else {
    }
    return
  }
  func.func @transform_0(%arg0: i32) -> (i32, i32, i32, i32) {
    %c0_i32 = arith.constant 0 : i32
    %c0_i32_0 = arith.constant 0 : i32
    %c0_i32_1 = arith.constant 0 : i32
    %c0_i32_2 = arith.constant 0 : i32
    return %arg0, %c0_i32, %c0_i32_0, %c0_i32_1 : i32, i32, i32, i32
  }
  func.func @transform_1(%arg0: i32) -> (i32, i32, i32) {
    %c0_i32 = arith.constant 0 : i32
    %c0_i32_0 = arith.constant 0 : i32
    %c0_i32_1 = arith.constant 0 : i32
    %c0_i32_2 = arith.constant 0 : i32
    return %c0_i32, %c0_i32_0, %c0_i32_1 : i32, i32, i32
  }
  func.func @transform_2(%arg0: i32) -> (i32, i32, i32) {
    %c0_i32 = arith.constant 0 : i32
    %c0_i32_0 = arith.constant 0 : i32
    %c0_i32_1 = arith.constant 0 : i32
    %c0_i32_2 = arith.constant 0 : i32
    return %c0_i32, %c0_i32_0, %c0_i32_1 : i32, i32, i32
  }
  func.func @transform_3(%arg0: i32) -> (i32, i32, i32) {
    %c0_i32 = arith.constant 0 : i32
    %c0_i32_0 = arith.constant 0 : i32
    %c0_i32_1 = arith.constant 0 : i32
    %c0_i32_2 = arith.constant 0 : i32
    return %c0_i32, %c0_i32_0, %c0_i32_1 : i32, i32, i32
  }
  func.func @transform_4(%arg0: i32) -> (i32, i32, i32) {
    %c0_i32 = arith.constant 0 : i32
    %c0_i32_0 = arith.constant 0 : i32
    %c0_i32_1 = arith.constant 0 : i32
    %c0_i32_2 = arith.constant 0 : i32
    return %c0_i32, %c0_i32_0, %c0_i32_1 : i32, i32, i32
  }
}

</mosaic_0001>

<bundles_post_ra>
// kernel: down_block_forward.1
= control target key start
LH: loop header
LB: loop body
LE: loop exit
PB: predicated region body
PF: predicated region fallthrough
CT: control target
= control target key end

     0   :  { %s1202_s15 = smov 0   ;;  %s1648_s0 = inlined_call_operand.vmem [shape: bf16[2,9,9,16], index: 0, kind: input, shape index: {}]   ;;  %s1649_s1 = inlined_call_operand.vmem [shape: bf16[4,16,8], index: 1, kind: input, shape index: {}]   ;;  %s1650_s2 = inlined_call_operand.vmem [shape: f32[1,1,8], index: 2, kind: input, shape index: {}]   ;;  %s1651_s3 = inlined_call_operand.vmem [shape: f32[1,1,8], index: 3, kind: input, shape index: {}]   ;;  %s1652_s4 = inlined_call_operand.vmem [shape: f32[2,64,8], index: 4, kind: output, shape index: {}]  }
   0x1 LB: > { %s1208_s16 = sadd.s32 4294967295, %s1175_s15   ;;  %p1038_p0 = scmp.ge.s32.totalorder %s1175_s15, 1  ;;  %s1175_s15 = sphi %s1202_s15, %s14_s15  }
   0x2   : > { %p157_p1 = scmp.lt.s32.totalorder %s1175_s15, 3 }
   0x4   : > { %p158_p2 = pnand %p1038_p0, %p157_p1 }
   0x5   : > { %p178_p3 = scmp.lt.s32.totalorder (!%p158_p2), %s1208_s16, 1  ;;  %s1082_s30 = sshll.u32 (!%p158_p2), %s1208_s16, 6 }
   0x6   : > { %161 = sbr.rel (%p158_p2) target bundleno = 389 (0x185), region = 36  ;;  %s1337_s7 = scalar_lea.vmem (!%p158_p2), %s1652_s4, %s1082_s30 }
   0x7   : > { %p1083_p4 = scmp.ne.s32.totalorder (!%p158_p2), %s1208_s16, 1 }
   0xb   : > { %v1155_v0 = vld [vmem:[%s1649_s1] sm:$0xff]   ;;  %v1156_v1 = vld [vmem:[%s1649_s1 + $0x8] sm:$0xff]   ;;  %s179_s21 = scalar_select %p178_p3, %s1208_s16, 1  ;;  %v1223_v2 = vld [vmem:[%s1649_s1 + $0x10] sm:$0xff]   ;;  %vm340_vm0 = vcmask 130048   ;;  %vm736_vm4 = vcmask 64512  }
   0xc   : > { %1116 = vmatprep.subr.bf16.mxu1 %v1155_v0  ;;  %1106 = vmatprep.subr.bf16.mxu0 %v1156_v1  ;;  %v1160_v3 = vld [vmem:[%s1649_s1 + $0x18] sm:$0xff]   ;;  %vm204_vm1 = vsmask.f32 3328  ;;  %vm205_vm2 = vsmask.f32 7440 }
   0xd   : > { %1117 = vmatpush3.bf16.msra.mxu1 %v1155_v0  ;;  %s1146_s24 = smul.u32 72, %s179_s21  ;;  %1107 = vmatpush3.bf16.msra.mxu0 %v1156_v1  ;;  %vm1260_vm3 = vmor %vm204_vm1, %vm205_vm2 }
   0xe   : > { %1126 = vmatprep.subr.bf16.mxu0 %v1223_v2  ;;  %1136 = vmatprep.subr.bf16.mxu1 %v1160_v3 }
   0xf   : > { %s1232_s29 = scalar_lea.vmem %s1648_s0, %s1146_s24 }
  0x10   : > { %v184_v4 = vld [vmem:[%s1232_s29] sm:$0xf]  ;;  %v1236_v5 = vld [vmem:[%s1232_s29 + $0x8] sm:$0xf]  ;;  %v1239_v6 = vld [vmem:[%s1232_s29 + $0x10] sm:$0xf] }
  0x11   : > { %v208_v7 = vshrl.u32 %v184_v4, 16  ;;  %v211_v8 = vshll.u32 %v184_v4, 16  ;;  %v222_v9 = vshrl.u32 %v1236_v5, 16  ;;  %v225_v10 = vshll.u32 %v1236_v5, 16  ;;  %v1244_v11 = vld [vmem:[%s1232_s29 + $0x18] sm:$0xf] }
  0x12   : > { %v1051_v12 = vcombine.low %v184_v4, %v1236_v5  ;;  %v1052_v13 = vcombine.low %v1239_v6, %v1244_v11  ;;  %v185_v14 = vld [vmem:[%s1232_s29 + $0x4] sm:$0x1]  ;;  %v187_v15 = vld [vmem:[%s1232_s29 + $0xc] sm:$0x1]  ;;  %v189_v16 = vld [vmem:[%s1232_s29 + $0x14] sm:$0x1] }
  0x13   : > { %v210_v17 = vrot.slane %v208_v7, 4  ;;  %v213_v18 = vrot.slane %v211_v8, 5  ;;  %v217_v19 = vshll.u32 %v185_v14, 16  ;;  %v224_v20 = vrot.slane %v222_v9, 4  ;;  %v191_v23 = vld [vmem:[%s1232_s29 + $0x1c] sm:$0x1] }
  0x14   : > { %1118 = vmatprep.mubr.msk.bf16.mxu1 %vm340_vm0, %v1051_v12  ;;  %v227_v21 = vrot.slane %v225_v10, 5  ;;  %v231_v22 = vshll.u32 %v187_v15, 16  ;;  %v236_v25 = vshrl.u32 %v1239_v6, 16  ;;  %v239_v26 = vshll.u32 %v1239_v6, 16  ;;  %v1258_v28 = vld [vmem:[%s1232_s29 + $0x20] sm:$0xf] }
  0x15   : > { %1119 = vmatmul.mubr.msk.bf16.vlgmr.msra.gmra.mxu1 %vm340_vm0, %v1052_v13  ;;  %v214_v24 = vor.u32 %v213_v18, %v210_v17  ;;  %v245_v27 = vshll.u32 %v189_v16, 16  ;;  %v219_v30 = vrot.slane %v217_v19, 5  ;;  %v250_v33 = vshrl.u32 %v1244_v11, 16  ;;  %v193_v34 = vld [vmem:[%s1232_s29 + $0x24] sm:$0x1] }
  0x16   : > { %v228_v31 = vor.u32 %v227_v21, %v224_v20  ;;  %v233_v32 = vrot.slane %v231_v22, 5  ;;  %1137 = vmatpush3.bf16.msra.mxu1 %v1160_v3  ;;  %v238_v36 = vrot.slane %v236_v25, 4  ;;  %v241_v37 = vrot.slane %v239_v26, 5  ;;  %v1272_v47 = vld [vmem:[%s1232_s29 + $0x28] sm:$0xf] }
  0x17   : > { %v215_v35 = vrot.slane %v214_v24, 4  ;;  %v247_v38 = vrot.slane %v245_v27, 5  ;;  %v252_v40 = vrot.slane %v250_v33, 4  ;;  %v253_v41 = vshll.u32 %v1244_v11, 16  ;;  %v1277_v52 = vld [vmem:[%s1232_s29 + $0x30] sm:$0xf] }
  0x18   : > { %v229_v39 = vrot.slane %v228_v31, 4  ;;  %v259_v42 = vshll.u32 %v191_v23, 16  ;;  %v242_v44 = vor.u32 %v241_v37, %v238_v36  ;;  %v264_v45 = vshrl.u32 %v1258_v28, 16  ;;  %v1280_v57 = vld [vmem:[%s1232_s29 + $0x38] sm:$0xf] }
  0x19   : > { %v220_v43 = vsel %vm1260_vm3, %v215_v35, %v219_v30  ;;  %v267_v46 = vshll.u32 %v1258_v28, 16  ;;  %v255_v49 = vrot.slane %v253_v41, 5  ;;  %v273_v51 = vshll.u32 %v193_v34, 16  ;;  %v195_v3 = vld [vmem:[%s1232_s29 + $0x2c] sm:$0x1] }
  0x1a   : > { %v234_v48 = vsel %vm1260_vm3, %v229_v39, %v233_v32  ;;  %v261_v50 = vrot.slane %v259_v42, 5  ;;  %v243_v53 = vrot.slane %v242_v44, 4  ;;  %v266_v54 = vrot.slane %v264_v45, 4  ;;  %v197_v10 = vld [vmem:[%s1232_s29 + $0x34] sm:$0x1] }
  0x1b   : > { %v269_v55 = vrot.slane %v267_v46, 5  ;;  %v1042_v56 = vcombine.low %v220_v43, %v234_v48  ;;  %v256_v58 = vor.u32 %v255_v49, %v252_v40  ;;  %v275_v59 = vrot.slane %v273_v51, 5  ;;  %v199_v19 = vld [vmem:[%s1232_s29 + $0x3c] sm:$0x1]  ;;  %v200_v24 = vld [vmem:[%s1232_s29 + $0x40] sm:$0xf] }
  0x1c   : > { %v278_v60 = vshrl.u32 %v1272_v47, 16  ;;  %v281_v61 = vshll.u32 %v1272_v47, 16  ;;  %v248_v62 = vsel %vm1260_vm3, %v243_v53, %v247_v38  ;;  %v1053_v0 = vcombine.low %v1258_v28, %v1272_v47  ;;  %v201_v31 = vld [vmem:[%s1232_s29 + $0x44] sm:$0x1] }
  0x1d   : > { %v270_v63 = vor.u32 %v269_v55, %v266_v54  ;;  %1108 = vmatprep.mubr.msk.bf16.mxu0 %vm340_vm0, %v1042_v56  ;;  %v292_v1 = vshrl.u32 %v1277_v52, 16  ;;  %v257_v4 = vrot.slane %v256_v58, 4  ;;  %v1073_v7 = vcombine.low %v234_v48, %v248_v62 }
  0x1e   : > { %v295_v8 = vshll.u32 %v1277_v52, 16  ;;  %v306_v9 = vshrl.u32 %v1280_v57, 16  ;;  %1122 = vmatprep.mubr.msk.bf16.mxu1 %vm340_vm0, %v1053_v0  ;;  %v309_v13 = vshll.u32 %v1280_v57, 16  ;;  %v1054_v14 = vcombine.low %v1277_v52, %v1280_v57 }
  0x1f   : > { %v271_v12 = vrot.slane %v270_v63, 4  ;;  %v280_v15 = vrot.slane %v278_v60, 4  ;;  %v262_v16 = vsel %vm1260_vm3, %v257_v4, %v261_v50  ;;  %v283_v17 = vrot.slane %v281_v61, 5 }
  0x20   : > { %v287_v18 = vshll.u32 %v195_v3, 16  ;;  %v294_v20 = vrot.slane %v292_v1, 4  ;;  %v1043_v21 = vcombine.low %v248_v62, %v262_v16  ;;  %1123 = vmatmul.mubr.msk.bf16.gmra.mxu1 %vm340_vm0, %v1054_v14  ;;  %v297_v22 = vrot.slane %v295_v8, 5 }
  0x21   : > { %v301_v23 = vshll.u32 %v197_v10, 16  ;;  %v276_v25 = vsel %vm1260_vm3, %v271_v12, %v275_v59  ;;  %v284_v26 = vor.u32 %v283_v17, %v280_v15  ;;  %v308_v30 = vrot.slane %v306_v9, 4  ;;  %1138 = vmatprep.mubr.msk.bf16.mxu1 %vm340_vm0, %v1073_v7 }
  0x22   : > { %v289_v27 = vrot.slane %v287_v18, 5  ;;  %1109 = vmatmul.mubr.msk.bf16.vlgmr.msra.gmra.mxu0 %vm340_vm0, %v1043_v21  ;;  %v298_v32 = vor.u32 %v297_v22, %v294_v20  ;;  %v311_v34 = vrot.slane %v309_v13, 5  ;;  %v315_v35 = vshll.u32 %v199_v19, 16 }
  0x23   : > { %v303_v33 = vrot.slane %v301_v23, 5  ;;  %v1074_v36 = vcombine.low %v262_v16, %v276_v25  ;;  %1127 = vmatpush3.bf16.msra.mxu0 %v1223_v2  ;;  %v285_v37 = vrot.slane %v284_v26, 4  ;;  %v622_v38 = vshrl.u32 %v200_v24, 16 }
  0x24   : > { %v625_v39 = vshll.u32 %v200_v24, 16  ;;  %v299_v40 = vrot.slane %v298_v32, 4  ;;  %v312_v41 = vor.u32 %v311_v34, %v308_v30  ;;  %v317_v42 = vrot.slane %v315_v35, 5 }
  0x25   : > { %v631_v43 = vshll.u32 %v201_v31, 16  ;;  %v290_v44 = vsel %vm1260_vm3, %v285_v37, %v289_v27  ;;  %v624_v45 = vrot.slane %v622_v38, 4  ;;  %v1062_v55 = vcombine.low %v1236_v5, %v1239_v6 }
  0x26   : > { %v627_v46 = vrot.slane %v625_v39, 5  ;;  %v1044_v48 = vcombine.low %v276_v25, %v290_v44  ;;  %v304_v49 = vsel %vm1260_vm3, %v299_v40, %v303_v33  ;;  %v313_v50 = vrot.slane %v312_v41, 4 }
  0x27   : > { %v1075_v51 = vcombine.low %v290_v44, %v304_v49  ;;  %v633_v2 = vrot.slane %v631_v43, 5  ;;  %v1063_v61 = vcombine.low %v1244_v11, %v1258_v28  ;;  %v1064_v5 = vcombine.low %v1272_v47, %v1277_v52 }
  0x28   : > { %v628_v53 = vor.u32 %v627_v46, %v624_v45  ;;  %1112 = vmatprep.mubr.msk.bf16.mxu0 %vm340_vm0, %v1044_v48  ;;  %v318_v54 = vsel %vm1260_vm3, %v313_v50, %v317_v42  ;;  %1139 = vmatmul.mubr.msk.bf16.vlgmr.msra.gmra.mxu1 %vm340_vm0, %v1074_v36  ;;  %v1065_v6 = vcombine.low %v1280_v57, %v200_v24 }
  0x29   : > { %v1045_v56 = vcombine.low %v304_v49, %v318_v54  ;;  %1142 = vmatprep.mubr.msk.bf16.mxu1 %vm340_vm0, %v1075_v51 }
  0x2a   : > { %v629_v58 = vrot.slane %v628_v53, 4 }
  0x2b   : > { %1113 = vmatmul.mubr.msk.bf16.gmra.mxu0 %vm340_vm0, %v1045_v56 }
  0x2c   : > { %v634_v59 = vsel %vm1260_vm3, %v629_v58, %v633_v2  ;;  %1128 = vmatprep.mubr.msk.bf16.mxu0 %vm340_vm0, %v1062_v55 }
  0x2d   : > { %v1076_v60 = vcombine.low %v318_v54, %v634_v59 }
  0x30   : > { %1143 = vmatmul.mubr.msk.bf16.gmra.mxu1 %vm340_vm0, %v1076_v60 }
  0x33   : > { %1129 = vmatmul.mubr.msk.bf16.vlgmr.msra.gmra.mxu0 %vm340_vm0, %v1063_v61 }
  0x34   : > { %1132 = vmatprep.mubr.msk.bf16.mxu0 %vm340_vm0, %v1064_v5 }
  0x3b   : > { %1133 = vmatmul.mubr.msk.bf16.gmra.mxu0 %vm340_vm0, %v1065_v6 }
  0xd5   : > { %v1120_v29 = vpop.f32.mrf.mxu1 }
  0xd7   : > { %v490_v62 = vpop.f32.mrf.mxu1 }
  0xd9   : > { %v1121_v63 = vpop.f32.mrf.mxu1 }
  0xdb   : > { %v493_v0 = vpop.f32.mrf.mxu1 }
  0xe0   : > { %v1124_v1 = vpop.f32.mrf.mxu1 }
  0xe2   : > { %v1110_v11 = vpop.f32.mrf.mxu0  ;;  %v506_v28 = vpop.f32.mrf.mxu1 }
  0xe3   : > { %v499_v15 = vadd.f32 %v1120_v29, %v1110_v11 }
  0xe4   : > { %v387_v3 = vpop.f32.mrf.mxu0  ;;  %v1125_v4 = vpop.f32.mrf.mxu1 }
  0xe5   : > { %v491_v18 = vadd.f32 %v490_v62, %v387_v3 }
  0xe6   : > { %v1111_v7 = vpop.f32.mrf.mxu0  ;;  %v509_v47 = vpop.f32.mrf.mxu1 }
  0xe7   : > { %v502_v21 = vadd.f32 %v1121_v63, %v1111_v7 }
  0xe8   : > { %v390_v52 = vpop.f32.mrf.mxu0  ;;  %v1140_v8 = vpop.f32.mrf.mxu1 }
  0xe9   : > { %v494_v26 = vadd.f32 %v493_v0, %v390_v52 }
  0xea   : > { %v695_v10 = vpop.f32.mrf.mxu1 }
  0xeb   : > { %v1114_v9 = vpop.f32.mrf.mxu0 }
  0xec   : > { %v1141_v13 = vpop.f32.mrf.mxu1  ;;  %v515_v32 = vadd.f32 %v1124_v1, %v1114_v9 }
  0xed   : > { %v403_v12 = vpop.f32.mrf.mxu0 }
  0xee   : > { %v698_v17 = vpop.f32.mrf.mxu1  ;;  %v507_v37 = vadd.f32 %v506_v28, %v403_v12 }
  0xef   : > { %v1115_v57 = vpop.f32.mrf.mxu0 }
  0xf0   : > { %v1144_v25 = vpop.f32.mrf.mxu1  ;;  %v518_v41 = vadd.f32 %v1125_v4, %v1115_v57 }
  0xf1   : > { %v406_v14 = vpop.f32.mrf.mxu0 }
  0xf2   : > { %v711_v35 = vpop.f32.mrf.mxu1  ;;  %v510_v46 = vadd.f32 %v509_v47, %v406_v14 }
  0xf3   : > { %v1130_v16 = vpop.f32.mrf.mxu0 }
  0xf4   : > { %v615_v19 = vadd.f32 %v1130_v16, %v499_v15  ;;  %v1145_v44 = vpop.f32.mrf.mxu1 }
  0xf5   : > { %v582_v20 = vpop.f32.mrf.mxu0 }
  0xf6   : > { %v728_v22 = vadd.f32 %v1140_v8, %v615_v19  ;;  %v613_v23 = vadd.f32 %v582_v20, %v491_v18  ;;  %v714_v2 = vpop.f32.mrf.mxu1 }
  0xf7   : > { %v1131_v24 = vpop.f32.mrf.mxu0 }
  0xf8   : > { %739 = vst.msk [vmem:[%s1337_s7 + $0x10] sm:$0xff] %vm736_vm4, %v728_v22  ;;  %v726_v27 = vadd.f32 %v695_v10, %v613_v23  ;;  %v616_v30 = vadd.f32 %v1131_v24, %v502_v21 }
  0xf9   : > { %v585_v31 = vpop.f32.mrf.mxu0 }
  0xfa   : > { %737 = vst.msk [vmem:[%s1337_s7] sm:$0xff] %vm736_vm4, %v726_v27  ;;  %v729_v33 = vadd.f32 %v1141_v13, %v616_v30  ;;  %v614_v34 = vadd.f32 %v585_v31, %v494_v26 }
  0xfb   : > { %v1134_v36 = vpop.f32.mrf.mxu0 }
  0xfc   : > { %740 = vst.msk [vmem:[%s1337_s7 + $0x18] sm:$0xff] %vm736_vm4, %v729_v33  ;;  %v727_v38 = vadd.f32 %v698_v17, %v614_v34  ;;  %v619_v39 = vadd.f32 %v1134_v36, %v515_v32 }
  0xfd   : > { %v598_v40 = vpop.f32.mrf.mxu0 }
  0xfe   : > { %738 = vst.msk [vmem:[%s1337_s7 + $0x8] sm:$0xff] %vm736_vm4, %v727_v38  ;;  %v732_v42 = vadd.f32 %v1144_v25, %v619_v39  ;;  %v617_v43 = vadd.f32 %v598_v40, %v507_v37 }
  0xff   : > { %v1135_v45 = vpop.f32.mrf.mxu0 }
 0x100   : > { %743 = vst.msk [vmem:[%s1337_s7 + $0x30] sm:$0xff] %vm736_vm4, %v732_v42  ;;  %v730_v48 = vadd.f32 %v711_v35, %v617_v43  ;;  %v620_v49 = vadd.f32 %v1135_v45, %v518_v41 }
 0x101   : > { %v601_v50 = vpop.f32.mrf.mxu0 }
 0x102   : > { %741 = vst.msk [vmem:[%s1337_s7 + $0x20] sm:$0xff] %vm736_vm4, %v730_v48  ;;  %v733_v51 = vadd.f32 %v1145_v44, %v620_v49  ;;  %v618_v53 = vadd.f32 %v601_v50, %v510_v46  ;;  %748 = sbr.rel (%p1083_p4) target bundleno = 389 (0x185), region = 40 }
 0x104   : > { %744 = vst.msk [vmem:[%s1337_s7 + $0x38] sm:$0xff] %vm736_vm4, %v733_v51  ;;  %v731_v54 = vadd.f32 %v714_v2, %v618_v53 }
 0x106   : > { %742 = vst.msk [vmem:[%s1337_s7 + $0x28] sm:$0xff] %vm736_vm4, %v731_v54 }
 0x10d   : > { %v1359_v55 = vld [vmem:[%s1652_s4] sm:$0xff]  ;;  %v1364_v56 = vld [vmem:[%s1652_s4 + $0x8] sm:$0xff]  ;;  %v1369_v58 = vld [vmem:[%s1652_s4 + $0x10] sm:$0xff] }
 0x10e   : > { %v1374_v59 = vld [vmem:[%s1652_s4 + $0x18] sm:$0xff]  ;;  %v765_v60 = vsel %vm736_vm4, %v1359_v55, 0.0  ;;  %v766_v61 = vsel %vm736_vm4, %v1364_v56, 0.0  ;;  %v768_v5 = vsel %vm736_vm4, %v1369_v58, 0.0  ;;  %v1385_v6 = vld [vmem:[%s1652_s4 + $0x20] sm:$0xff]  ;;  %v1395_v63 = vld [vmem:[%s1652_s4 + $0x48] sm:$0xff] }
 0x10f   : > { %v1390_v29 = vld [vmem:[%s1652_s4 + $0x40] sm:$0xff]  ;;  %v767_v62 = vadd.f32 %v766_v61, %v765_v60  ;;  %v1400_v0 = vld [vmem:[%s1652_s4 + $0x50] sm:$0xff]  ;;  %v1405_v1 = vld [vmem:[%s1652_s4 + $0x58] sm:$0xff]  ;;  %v770_v11 = vsel %vm736_vm4, %v1374_v59, 0.0  ;;  %v787_v7 = vsel %vm736_vm4, %v1395_v63, 0.0  ;;  %v772_v8 = vsel %vm736_vm4, %v1385_v6, 0.0 }
 0x110   : > { %v786_v28 = vsel %vm736_vm4, %v1390_v29, 0.0  ;;  %v1414_v3 = vld [vmem:[%s1652_s4 + $0x28] sm:$0xff]  ;;  %v789_v47 = vsel %vm736_vm4, %v1400_v0, 0.0  ;;  %v1423_v52 = vld [vmem:[%s1652_s4 + $0x60] sm:$0xff]  ;;  %v1430_v10 = vld [vmem:[%s1652_s4 + $0x30] sm:$0xff]  ;;  %v791_v57 = vsel %vm736_vm4, %v1405_v1, 0.0 }
 0x111   : > { %v769_v4 = vadd.f32 %v768_v5, %v767_v62  ;;  %v788_v9 = vadd.f32 %v787_v7, %v786_v28  ;;  %v1437_v13 = vld [vmem:[%s1652_s4 + $0x68] sm:$0xff]  ;;  %v774_v14 = vsel %vm736_vm4, %v1414_v3, 0.0  ;;  %v1444_v16 = vld [vmem:[%s1652_s4 + $0x38] sm:$0xff]  ;;  %v793_v18 = vsel %vm736_vm4, %v1423_v52, 0.0  ;;  %v1451_v19 = vld [vmem:[%s1652_s4 + $0x70] sm:$0xff] }
 0x112   : > { %v776_v20 = vsel %vm736_vm4, %v1430_v10, 0.0  ;;  %v795_v23 = vsel %vm736_vm4, %v1437_v13, 0.0  ;;  %v1460_v24 = vld [vmem:[%s1652_s4 + $0x78] sm:$0xff]  ;;  %v778_v25 = vsel %vm736_vm4, %v1444_v16, 0.0  ;;  %v797_v30 = vsel %vm736_vm4, %v1451_v19, 0.0 }
 0x113   : > { %v771_v12 = vadd.f32 %v770_v11, %v769_v4  ;;  %v790_v15 = vadd.f32 %v789_v47, %v788_v9  ;;  %v799_v33 = vsel %vm736_vm4, %v1460_v24, 0.0 }
 0x115   : > { %v773_v17 = vadd.f32 %v772_v8, %v771_v12  ;;  %v792_v21 = vadd.f32 %v791_v57, %v790_v15 }
 0x117   : > { %v775_v22 = vadd.f32 %v774_v14, %v773_v17  ;;  %v794_v26 = vadd.f32 %v793_v18, %v792_v21 }
 0x119   : > { %v777_v27 = vadd.f32 %v776_v20, %v775_v22  ;;  %v796_v31 = vadd.f32 %v795_v23, %v794_v26 }
 0x11b   : > { %v779_v32 = vadd.f32 %v778_v25, %v777_v27  ;;  %v798_v34 = vadd.f32 %v797_v30, %v796_v31 }
 0x11d   : > { %v780_v35 = vrot.slane %v779_v32, 4  ;;  %v800_v36 = vadd.f32 %v799_v33, %v798_v34 }
 0x11f   : > { %v781_v37 = vadd.f32 %v780_v35, %v779_v32  ;;  %v801_v38 = vrot.slane %v800_v36, 4 }
 0x121   : > { %v782_v39 = vrot.slane %v781_v37, 2  ;;  %v802_v40 = vadd.f32 %v801_v38, %v800_v36 }
 0x123   : > { %v783_v41 = vadd.f32 %v782_v39, %v781_v37  ;;  %v803_v42 = vrot.slane %v802_v40, 2 }
 0x125   : > { %v784_v43 = vrot.slane %v783_v41, 1  ;;  %v804_v44 = vadd.f32 %v803_v42, %v802_v40 }
 0x127   : > { %v785_v45 = vadd.f32 %v784_v43, %v783_v41  ;;  %v805_v46 = vrot.slane %v804_v44, 1 }
 0x129   : > { %v806_v48 = vadd.f32 %v805_v46, %v804_v44  ;;  %v807_v49 = vsel %vm736_vm4, %v785_v45, 0.0 }
 0x12b   : > { %v808_v50 = vsel %vm736_vm4, %v806_v48, 0.0 }
 0x12c   : > { %v809_v51 = vadd.f32 %v808_v50, %v807_v49 }
 0x12e   : > { %v1470_v53 = vmul.f32 0.0078125, %v809_v51 }
 0x130   : > { %v812_v2 = vsub.f32 %v1359_v55, %v1470_v53  ;;  %v813_v54 = vsub.f32 %v1364_v56, %v1470_v53  ;;  %v814_v60 = vsub.f32 %v1369_v58, %v1470_v53  ;;  %v815_v61 = vsub.f32 %v1374_v59, %v1470_v53 }
 0x131   : > { %v820_v5 = vsub.f32 %v1390_v29, %v1470_v53  ;;  %v821_v62 = vsub.f32 %v1395_v63, %v1470_v53  ;;  %v822_v11 = vsub.f32 %v1400_v0, %v1470_v53  ;;  %v816_v28 = vsub.f32 %v1385_v6, %v1470_v53 }
 0x132   : > { %v823_v4 = vsub.f32 %v1405_v1, %v1470_v53  ;;  %v828_v7 = vmul.f32 %v812_v2, %v812_v2  ;;  %v829_v47 = vmul.f32 %v813_v54, %v813_v54  ;;  %v830_v8 = vmul.f32 %v814_v60, %v814_v60 }
 0x133   : > { %v817_v9 = vsub.f32 %v1414_v3, %v1470_v53  ;;  %v824_v12 = vsub.f32 %v1423_v52, %v1470_v53  ;;  %v831_v57 = vmul.f32 %v815_v61, %v815_v61  ;;  %v836_v14 = vmul.f32 %v820_v5, %v820_v5 }
 0x134   : > { %v837_v15 = vmul.f32 %v821_v62, %v821_v62  ;;  %v838_v17 = vmul.f32 %v822_v11, %v822_v11  ;;  %v818_v18 = vsub.f32 %v1430_v10, %v1470_v53  ;;  %v819_v20 = vsub.f32 %v1444_v16, %v1470_v53 }
 0x135   : > { %v825_v21 = vsub.f32 %v1437_v13, %v1470_v53  ;;  %v832_v22 = vmul.f32 %v816_v28, %v816_v28  ;;  %v839_v23 = vmul.f32 %v823_v4, %v823_v4  ;;  %v844_v25 = vsel %vm736_vm4, %v828_v7, 0.0 }
 0x136   : > { %v845_v26 = vsel %vm736_vm4, %v829_v47, 0.0  ;;  %v847_v27 = vsel %vm736_vm4, %v830_v8, 0.0  ;;  %v826_v30 = vsub.f32 %v1451_v19, %v1470_v53  ;;  %v833_v31 = vmul.f32 %v817_v9, %v817_v9 }
 0x137   : > { %v840_v32 = vmul.f32 %v824_v12, %v824_v12  ;;  %v846_v33 = vadd.f32 %v845_v26, %v844_v25  ;;  %v849_v34 = vsel %vm736_vm4, %v831_v57, 0.0  ;;  %v865_v35 = vsel %vm736_vm4, %v836_v14, 0.0 }
 0x138   : > { %v866_v36 = vsel %vm736_vm4, %v837_v15, 0.0  ;;  %v868_v37 = vsel %vm736_vm4, %v838_v17, 0.0  ;;  %v827_v38 = vsub.f32 %v1460_v24, %v1470_v53  ;;  %v834_v41 = vmul.f32 %v818_v18, %v818_v18 }
 0x139   : > { %v848_v39 = vadd.f32 %v847_v27, %v846_v33  ;;  %v867_v40 = vadd.f32 %v866_v36, %v865_v35  ;;  %v841_v42 = vmul.f32 %v825_v21, %v825_v21  ;;  %v851_v43 = vsel %vm736_vm4, %v832_v22, 0.0 }
 0x13a   : > { %v870_v44 = vsel %vm736_vm4, %v839_v23, 0.0  ;;  %v835_v48 = vmul.f32 %v819_v20, %v819_v20  ;;  %v842_v49 = vmul.f32 %v826_v30, %v826_v30  ;;  %v853_v50 = vsel %vm736_vm4, %v833_v31, 0.0 }
 0x13b   : > { %v850_v45 = vadd.f32 %v849_v34, %v848_v39  ;;  %v869_v46 = vadd.f32 %v868_v37, %v867_v40  ;;  %v872_v51 = vsel %vm736_vm4, %v840_v32, 0.0  ;;  %v843_v60 = vmul.f32 %v827_v38, %v827_v38  ;;  %v890_v38 = vld [vmem:[%s1650_s2] sm:$0x1] }
 0x13c   : > { %v855_v61 = vsel %vm736_vm4, %v834_v41, 0.0  ;;  %v874_v5 = vsel %vm736_vm4, %v841_v42, 0.0  ;;  %v857_v28 = vsel %vm736_vm4, %v835_v48, 0.0  ;;  %v876_v4 = vsel %vm736_vm4, %v842_v49, 0.0  ;;  %v894_v42 = vld [vmem:[%s1651_s3] sm:$0x1] }
 0x13d   : > { %v852_v2 = vadd.f32 %v851_v43, %v850_v45  ;;  %v871_v54 = vadd.f32 %v870_v44, %v869_v46  ;;  %v878_v8 = vsel %vm736_vm4, %v843_v60, 0.0  ;;  %v898_v36 = vlaneseq }
 0x13f   : > { %v854_v62 = vadd.f32 %v853_v50, %v852_v2  ;;  %v873_v11 = vadd.f32 %v872_v51, %v871_v54  ;;  %v899_v37 = vshrl.u32 %v898_v36, 7 }
 0x141   : > { %v856_v7 = vadd.f32 %v855_v61, %v854_v62  ;;  %v875_v47 = vadd.f32 %v874_v5, %v873_v11  ;;  %v900_v39 = vsub.s32 0, %v899_v37 }
 0x143   : > { %v858_v9 = vadd.f32 %v857_v28, %v856_v7  ;;  %v877_v12 = vadd.f32 %v876_v4, %v875_v47 }
 0x145   : > { %v859_v57 = vrot.slane %v858_v9, 4  ;;  %v879_v14 = vadd.f32 %v878_v8, %v877_v12 }
 0x147   : > { %v860_v15 = vadd.f32 %v859_v57, %v858_v9  ;;  %v880_v17 = vrot.slane %v879_v14, 4 }
 0x149   : > { %v861_v18 = vrot.slane %v860_v15, 2  ;;  %v881_v20 = vadd.f32 %v880_v17, %v879_v14 }
 0x14b   : > { %v862_v21 = vadd.f32 %v861_v18, %v860_v15  ;;  %v882_v22 = vrot.slane %v881_v20, 2 }
 0x14d   : > { %v863_v23 = vrot.slane %v862_v21, 1  ;;  %v883_v25 = vadd.f32 %v882_v22, %v881_v20 }
 0x14f   : > { %v864_v26 = vadd.f32 %v863_v23, %v862_v21  ;;  %v884_v27 = vrot.slane %v883_v25, 1 }
 0x151   : > { %v885_v30 = vadd.f32 %v884_v27, %v883_v25  ;;  %v886_v31 = vsel %vm736_vm4, %v864_v26, 0.0 }
 0x153   : > { %v887_v32 = vsel %vm736_vm4, %v885_v30, 0.0 }
 0x154   : > { %v888_v33 = vadd.f32 %v887_v32, %v886_v31 }
 0x156   : > { %v889_v34 = vmul.f32 0.0078125, %v888_v33 }
 0x158   : > { %v891_v35 = vadd.f32 1e-05, %v889_v34 }
 0x15a   : > { %1167 = vrsqrt.f32 %v891_v35 }
 0x167   : > { %v1168_v40 = vpop.eup %1167 }
 0x168   : > { %v893_v41 = vmul.f32 %v1168_v40, %v890_v38 }
 0x16a   : > { %v895_v43 = vmul.f32 %v893_v41, %v1470_v53  ;;  %v1529_v44 = vrot.slane %v893_v41, %v900_v39 }
 0x16c   : > { %v896_v45 = vsub.f32 %v894_v42, %v895_v43  ;;  %v903_v46 = vmul.f32 %v1529_v44, %v1359_v55  ;;  %v904_v48 = vmul.f32 %v1529_v44, %v1364_v56  ;;  %v905_v49 = vmul.f32 %v1529_v44, %v1369_v58 }
 0x16d   : > { %v906_v50 = vmul.f32 %v1529_v44, %v1374_v59  ;;  %v907_v51 = vmul.f32 %v1529_v44, %v1385_v6  ;;  %v908_v53 = vmul.f32 %v1529_v44, %v1414_v3  ;;  %v909_v2 = vmul.f32 %v1529_v44, %v1430_v10 }
 0x16e   : > { %v1545_v54 = vrot.slane %v896_v45, %v900_v39  ;;  %v910_v55 = vmul.f32 %v1529_v44, %v1444_v16  ;;  %v911_v56 = vmul.f32 %v1529_v44, %v1390_v29  ;;  %v912_v58 = vmul.f32 %v1529_v44, %v1395_v63 }
 0x16f   : > { %v913_v59 = vmul.f32 %v1529_v44, %v1400_v0  ;;  %v914_v6 = vmul.f32 %v1529_v44, %v1405_v1  ;;  %v915_v3 = vmul.f32 %v1529_v44, %v1423_v52  ;;  %v916_v10 = vmul.f32 %v1529_v44, %v1437_v13 }
 0x170   : > { %v925_v16 = vadd.f32 %v1545_v54, %v903_v46  ;;  %v926_v60 = vadd.f32 %v1545_v54, %v904_v48  ;;  %v927_v29 = vadd.f32 %v1545_v54, %v905_v49  ;;  %v928_v63 = vadd.f32 %v1545_v54, %v906_v50 }
 0x171   : > { %v929_v61 = vadd.f32 %v1545_v54, %v907_v51  ;;  %v930_v0 = vadd.f32 %v1545_v54, %v908_v53  ;;  %v931_v1 = vadd.f32 %v1545_v54, %v909_v2  ;;  %v932_v5 = vadd.f32 %v1545_v54, %v910_v55 }
 0x172   : > { %vm941_vm5 = vcmp.ge.f32.partialorder %v925_v16, 0.0  ;;  %v957_v52 = vmul.f32 0.2, %v925_v16  ;;  %vm942_vm6 = vcmp.ge.f32.partialorder %v926_v60, 0.0  ;;  %v958_v13 = vmul.f32 0.2, %v926_v60 }
 0x173   : > { %vm943_vm7 = vcmp.ge.f32.partialorder %v927_v29, 0.0  ;;  %v959_v62 = vmul.f32 0.2, %v927_v29  ;;  %vm944_vm8 = vcmp.ge.f32.partialorder %v928_v63, 0.0  ;;  %v960_v11 = vmul.f32 0.2, %v928_v63 }
 0x174   : > { %v973_v28 = vsel %vm941_vm5, %v925_v16, %v957_v52  ;;  %v974_v4 = vsel %vm942_vm6, %v926_v60, %v958_v13  ;;  %vm945_vm9 = vcmp.ge.f32.partialorder %v929_v61, 0.0  ;;  %v961_v7 = vmul.f32 0.2, %v929_v61 }
 0x175   : > { %989 = vst.msk [vmem:[%s1652_s4] sm:$0xff] %vm736_vm4, %v973_v28  ;;  %990 = vst.msk [vmem:[%s1652_s4 + $0x8] sm:$0xff] %vm736_vm4, %v974_v4  ;;  %v975_v47 = vsel %vm943_vm7, %v927_v29, %v959_v62  ;;  %v976_v8 = vsel %vm944_vm8, %v928_v63, %v960_v11  ;;  %vm946_vm10 = vcmp.ge.f32.partialorder %v930_v0, 0.0  ;;  %v962_v9 = vmul.f32 0.2, %v930_v0 }
 0x176   : > { %991 = vst.msk [vmem:[%s1652_s4 + $0x10] sm:$0xff] %vm736_vm4, %v975_v47  ;;  %992 = vst.msk [vmem:[%s1652_s4 + $0x18] sm:$0xff] %vm736_vm4, %v976_v8  ;;  %v977_v12 = vsel %vm945_vm9, %v929_v61, %v961_v7  ;;  %vm947_vm11 = vcmp.ge.f32.partialorder %v931_v1, 0.0  ;;  %v963_v57 = vmul.f32 0.2, %v931_v1  ;;  %vm948_vm12 = vcmp.ge.f32.partialorder %v932_v5, 0.0 }
 0x177   : > { %993 = vst.msk [vmem:[%s1652_s4 + $0x20] sm:$0xff] %vm736_vm4, %v977_v12  ;;  %v978_v14 = vsel %vm946_vm10, %v930_v0, %v962_v9  ;;  %v964_v15 = vmul.f32 0.2, %v932_v5  ;;  %v933_v17 = vadd.f32 %v1545_v54, %v911_v56  ;;  %v934_v18 = vadd.f32 %v1545_v54, %v912_v58 }
 0x178   : > { %994 = vst.msk [vmem:[%s1652_s4 + $0x28] sm:$0xff] %vm736_vm4, %v978_v14  ;;  %v979_v20 = vsel %vm947_vm11, %v931_v1, %v963_v57  ;;  %v935_v21 = vadd.f32 %v1545_v54, %v913_v59  ;;  %v936_v22 = vadd.f32 %v1545_v54, %v914_v6  ;;  %v937_v23 = vadd.f32 %v1545_v54, %v915_v3 }
 0x179   : > { %995 = vst.msk [vmem:[%s1652_s4 + $0x30] sm:$0xff] %vm736_vm4, %v979_v20  ;;  %v980_v25 = vsel %vm948_vm12, %v932_v5, %v964_v15  ;;  %vm949_vm13 = vcmp.ge.f32.partialorder %v933_v17, 0.0  ;;  %v965_v26 = vmul.f32 0.2, %v933_v17  ;;  %vm950_vm14 = vcmp.ge.f32.partialorder %v934_v18, 0.0 }
 0x17a   : > { %996 = vst.msk [vmem:[%s1652_s4 + $0x38] sm:$0xff] %vm736_vm4, %v980_v25  ;;  %v966_v27 = vmul.f32 0.2, %v934_v18  ;;  %vm951_vm15 = vcmp.ge.f32.partialorder %v935_v21, 0.0  ;;  %v967_v30 = vmul.f32 0.2, %v935_v21  ;;  %v938_v36 = vadd.f32 %v1545_v54, %v916_v10 }
 0x17b   : > { %vm952_vm0 = vcmp.ge.f32.partialorder %v936_v22, 0.0  ;;  %v981_v31 = vsel %vm949_vm13, %v933_v17, %v965_v26  ;;  %v968_v32 = vmul.f32 0.2, %v936_v22  ;;  %vm953_vm1 = vcmp.ge.f32.partialorder %v937_v23, 0.0 }
 0x17c   : > { %v969_v33 = vmul.f32 0.2, %v937_v23  ;;  %997 = vst.msk [vmem:[%s1652_s4 + $0x40] sm:$0xff] %vm736_vm4, %v981_v31  ;;  %v982_v34 = vsel %vm950_vm14, %v934_v18, %v966_v27  ;;  %v983_v35 = vsel %vm951_vm15, %v935_v21, %v967_v30  ;;  %v917_v37 = vmul.f32 %v1529_v44, %v1451_v19 }
 0x17d   : > { %998 = vst.msk [vmem:[%s1652_s4 + $0x48] sm:$0xff] %vm736_vm4, %v982_v34  ;;  %999 = vst.msk [vmem:[%s1652_s4 + $0x50] sm:$0xff] %vm736_vm4, %v983_v35  ;;  %v984_v38 = vsel %vm952_vm0, %v936_v22, %v968_v32  ;;  %v918_v40 = vmul.f32 %v1529_v44, %v1460_v24  ;;  %vm954_vm2 = vcmp.ge.f32.partialorder %v938_v36, 0.0  ;;  %v970_v19 = vmul.f32 0.2, %v938_v36 }
 0x17e   : > { %v985_v39 = vsel %vm953_vm1, %v937_v23, %v969_v33  ;;  %1000 = vst.msk [vmem:[%s1652_s4 + $0x58] sm:$0xff] %vm736_vm4, %v984_v38  ;;  %v939_v41 = vadd.f32 %v1545_v54, %v917_v37 }
 0x17f   : > { %1001 = vst.msk [vmem:[%s1652_s4 + $0x60] sm:$0xff] %vm736_vm4, %v985_v39  ;;  %v940_v42 = vadd.f32 %v1545_v54, %v918_v40  ;;  %v986_v43 = vsel %vm954_vm2, %v938_v36, %v970_v19 }
 0x180   : > { %vm955_vm3 = vcmp.ge.f32.partialorder %v939_v41, 0.0  ;;  %v971_v45 = vmul.f32 0.2, %v939_v41  ;;  %1002 = vst.msk [vmem:[%s1652_s4 + $0x68] sm:$0xff] %vm736_vm4, %v986_v43 }
 0x181   : > { %vm956_vm5 = vcmp.ge.f32.partialorder %v940_v42, 0.0  ;;  %v972_v24 = vmul.f32 0.2, %v940_v42 }
 0x182   : > { %v987_v44 = vsel %vm955_vm3, %v939_v41, %v971_v45 }
 0x183   : > { %1003 = vst.msk [vmem:[%s1652_s4 + $0x70] sm:$0xff] %vm736_vm4, %v987_v44  ;;  %v988_v46 = vsel %vm956_vm5, %v940_v42, %v972_v24 }
 0x184   : > { %1004 = vst.msk [vmem:[%s1652_s4 + $0x78] sm:$0xff] %vm736_vm4, %v988_v46 }
 0x185 PF: > { %s14_s15 = sadd.s32 1, %s1175_s15  }
 0x186   : > { %p11_p5 = scmp.ge.s32.totalorder %s14_s15, 4  }
 0x188   :  { %13 = sbr.rel (!%p11_p5) target bundleno = 1 (0x1), region = 70 }

</bundles_post_ra>
